<compile_context>
chip_gen: v7x
topology: tpu7x:2x2x1
jax: 0.10.0
libtpu: 0.0.40
codegen_flags: <defaults>
</compile_context>

<pallas_src>
import jax
import jax.numpy as jnp
from jax.experimental import pallas as pl
from jax.experimental.pallas import tpu as pltpu


# Packed parameter layout (single f32 SMEM vector, 64 entries, row-major (in,out)):
#   [0:4)   w1   (Linear(1,4) weight)
#   [4:8)   b1
#   [8:40)  w2   (Linear(4,8) weight, w2[i, j] -> 8 + i*8 + j)
#   [40:48) b2
#   [48:56) w3   (Linear(8,1) weight)
#   [56]    b3
_W1, _B1, _W2, _B2, _W3, _B3 = 0, 4, 8, 40, 48, 56
_PARAM_LEN = 64
_LANES = 128


def _round_up(x, m):
    return (x + m - 1) // m * m


def _disc_kernel(p_ref, z_ref, o_ref):
    """Whole MLP on one full-vreg slab block.

    p_ref : (64,)            f32 in SMEM (packed weights/biases, scalar reads)
    z_ref : (block_rows,128) f32 in VMEM (batch elements tiled over sublanes+lanes)
    o_ref : (block_rows,128) f32 in VMEM
    """
    z = z_ref[...]                                                     # (R, 128)

    # Layer 1: Linear(1, 4) + ReLU -> 4 full-block vectors (outer product w1 * z).
    h1 = [jnp.maximum(p_ref[_W1 + f] * z + p_ref[_B1 + f], 0.0) for f in range(4)]

    # Layers 2 + 3 fused: for each of the 8 hidden units compute
    # h2_j = relu(sum_i h1_i * w2[i,j] + b2[j]) and immediately fold it into the
    # layer-3 accumulator (no list of 8 live full-block intermediates).
    acc3 = None
    for j in range(8):
        a = h1[0] * p_ref[_W2 + 0 * 8 + j]
        for i in range(1, 4):
            a = a + h1[i] * p_ref[_W2 + i * 8 + j]
        h2j = jnp.maximum(a + p_ref[_B2 + j], 0.0)
        contrib = h2j * p_ref[_W3 + j]
        acc3 = contrib if acc3 is None else acc3 + contrib

    x = acc3 + p_ref[_B3]

    # Sigmoid on the EUP: exp + approx reciprocal (both use the otherwise-idle slot).
    e = jnp.exp(-x)
    o_ref[...] = pl.reciprocal(1.0 + e, approx=True).astype(o_ref.dtype)


def pack_params(params):
    """Flatten the six weight/bias arrays into one 64-entry f32 vector.

    Weights are expected as (in, out); transpose PyTorch (out, in) weights first.
    """
    w1, b1, w2, b2, w3, b3 = params
    flat = jnp.concatenate(
        [w1.reshape(-1), b1.reshape(-1),
         w2.reshape(-1), b2.reshape(-1),
         w3.reshape(-1), b3.reshape(-1)]
    ).astype(jnp.float32)
    return jnp.zeros((_PARAM_LEN,), jnp.float32).at[: flat.shape[0]].set(flat)


def discriminator_forward(z, params, *, block_rows=512):
    """z: (B, 1) float32 -> (B, 1) float32 (matches the PyTorch module).

    block_rows * 128 * 4 bytes per input block (default 256 KiB); sweepable.
    """
    B = z.shape[0]
    packed = pack_params(params)

    # Full-vreg slab layout: batch tiled over sublanes (rows) and lanes (128).
    rows = _round_up(B, _LANES) // _LANES
    rows = _round_up(rows, 8)                       # fill all 8 sublanes
    blk_rows = _round_up(min(block_rows, rows), 8)  # block rows, multiple of 8
    rows = _round_up(rows, blk_rows)                # whole number of blocks
    total = rows * _LANES

    zl = z.astype(jnp.float32).reshape(-1)
    if total != B:
        zl = jnp.pad(zl, (0, total - B))            # padded lanes sliced off below
    zl = zl.reshape(rows, _LANES)

    out = pl.pallas_call(
        _disc_kernel,
        out_shape=jax.ShapeDtypeStruct((rows, _LANES), jnp.float32),
        grid=(rows // blk_rows,),
        in_specs=[
            pl.BlockSpec(memory_space=pltpu.MemorySpace.SMEM),   # packed params (one copy)
            pl.BlockSpec((blk_rows, _LANES), lambda i: (i, 0)),  # z, full-vreg slabs
        ],
        out_specs=pl.BlockSpec((blk_rows, _LANES), lambda i: (i, 0)),
        compiler_params=pltpu.CompilerParams(
            dimension_semantics=("parallel",),   # v7x dual-TC shards when grid > 1
        ),
    )(packed, zl)

    return out.reshape(-1)[:B].reshape(B, 1)


def init_params(key):
    """PyTorch nn.Linear default init: U(-1/sqrt(fan_in), 1/sqrt(fan_in)).
    Weights stored as (in, out) so y = x @ W + b."""
    ks = jax.random.split(key, 6)

    def linear(kw, kb, fan_in, fan_out):
        bound = 1.0 / jnp.sqrt(jnp.float32(fan_in))
        w = jax.random.uniform(kw, (fan_in, fan_out), jnp.float32, -bound, bound)
        b = jax.random.uniform(kb, (1, fan_out), jnp.float32, -bound, bound)
        return w, b

    w1, b1 = linear(ks[0], ks[1], 1, 4)
    w2, b2 = linear(ks[2], ks[3], 4, 8)
    w3, b3 = linear(ks[4], ks[5], 8, 1)
    return (w1, b1, w2, b2, w3, b3)


def reference_forward(z, params):
    w1, b1, w2, b2, w3, b3 = params
    h1 = jnp.maximum(z @ w1 + b1, 0.0)
    h2 = jnp.maximum(h1 @ w2 + b2, 0.0)
    return jax.nn.sigmoid(h2 @ w3 + b3)


if __name__ == "__main__":
    key = jax.random.PRNGKey(0)
    k_param, k_z = jax.random.split(key)

    batch = 128  # module default batch_size
    params = init_params(k_param)
    z = jax.random.normal(k_z, (batch, 1), jnp.float32)

    out = discriminator_forward(z, params)
    out = jax.block_until_ready(out)

    ref = reference_forward(z, params)
    assert out.shape == (batch, 1)
    # Tolerance loosened slightly to cover the EUP approx-reciprocal sigmoid.
    assert jnp.allclose(out, ref, atol=2e-3, rtol=2e-3), "mismatch vs reference"

    print("KERNEL_OK")
</pallas_src>

<mosaic_0001>
module attributes {stable_mosaic.version = 11 : i64} {
  func.func @_disc_kernel(%arg0: i32, %arg1: memref<64xf32, #tpu.memory_space<smem>>, %arg2: memref<8x128xf32, #tpu.memory_space<vmem>>, %arg3: memref<8x128xf32, #tpu.memory_space<vmem>>) attributes {dimension_semantics = [#tpu.dimension_semantics<parallel>], iteration_bounds = array<i64: 1>, scalar_prefetch = 0 : i64, scratch_operands = 0 : i64, tpu.core_type = #tpu.core_type<tc>, window_params = [{transform_indices = @transform_0, window_bounds = array<i64: 64>}, {transform_indices = @transform_1, window_bounds = array<i64: 8, 128>}, {transform_indices = @transform_2, window_bounds = array<i64: 8, 128>}]} {
    %c0 = arith.constant 0 : index
    %c0_0 = arith.constant 0 : index
    %0 = vector.load %arg2[%c0, %c0_0] : memref<8x128xf32, #tpu.memory_space<vmem>>, vector<8x128xf32>
    %c0_1 = arith.constant 0 : index
    %1 = memref.load %arg1[%c0_1] : memref<64xf32, #tpu.memory_space<smem>>
    %2 = vector.broadcast %1 : f32 to vector<8x128xf32>
    %3 = arith.mulf %2, %0 : vector<8x128xf32>
    %c4 = arith.constant 4 : index
    %4 = memref.load %arg1[%c4] : memref<64xf32, #tpu.memory_space<smem>>
    %5 = vector.broadcast %4 : f32 to vector<8x128xf32>
    %6 = arith.addf %3, %5 : vector<8x128xf32>
    %cst = arith.constant 0.000000e+00 : f32
    %7 = vector.broadcast %cst : f32 to vector<8x128xf32>
    %8 = arith.maximumf %6, %7 : vector<8x128xf32>
    %c1 = arith.constant 1 : index
    %9 = memref.load %arg1[%c1] : memref<64xf32, #tpu.memory_space<smem>>
    %10 = vector.broadcast %9 : f32 to vector<8x128xf32>
    %11 = arith.mulf %10, %0 : vector<8x128xf32>
    %c5 = arith.constant 5 : index
    %12 = memref.load %arg1[%c5] : memref<64xf32, #tpu.memory_space<smem>>
    %13 = vector.broadcast %12 : f32 to vector<8x128xf32>
    %14 = arith.addf %11, %13 : vector<8x128xf32>
    %cst_2 = arith.constant 0.000000e+00 : f32
    %15 = vector.broadcast %cst_2 : f32 to vector<8x128xf32>
    %16 = arith.maximumf %14, %15 : vector<8x128xf32>
    %c2 = arith.constant 2 : index
    %17 = memref.load %arg1[%c2] : memref<64xf32, #tpu.memory_space<smem>>
    %18 = vector.broadcast %17 : f32 to vector<8x128xf32>
    %19 = arith.mulf %18, %0 : vector<8x128xf32>
    %c6 = arith.constant 6 : index
    %20 = memref.load %arg1[%c6] : memref<64xf32, #tpu.memory_space<smem>>
    %21 = vector.broadcast %20 : f32 to vector<8x128xf32>
    %22 = arith.addf %19, %21 : vector<8x128xf32>
    %cst_3 = arith.constant 0.000000e+00 : f32
    %23 = vector.broadcast %cst_3 : f32 to vector<8x128xf32>
    %24 = arith.maximumf %22, %23 : vector<8x128xf32>
    %c3 = arith.constant 3 : index
    %25 = memref.load %arg1[%c3] : memref<64xf32, #tpu.memory_space<smem>>
    %26 = vector.broadcast %25 : f32 to vector<8x128xf32>
    %27 = arith.mulf %26, %0 : vector<8x128xf32>
    %c7 = arith.constant 7 : index
    %28 = memref.load %arg1[%c7] : memref<64xf32, #tpu.memory_space<smem>>
    %29 = vector.broadcast %28 : f32 to vector<8x128xf32>
    %30 = arith.addf %27, %29 : vector<8x128xf32>
    %cst_4 = arith.constant 0.000000e+00 : f32
    %31 = vector.broadcast %cst_4 : f32 to vector<8x128xf32>
    %32 = arith.maximumf %30, %31 : vector<8x128xf32>
    %c8 = arith.constant 8 : index
    %33 = memref.load %arg1[%c8] : memref<64xf32, #tpu.memory_space<smem>>
    %34 = vector.broadcast %33 : f32 to vector<8x128xf32>
    %35 = arith.mulf %8, %34 : vector<8x128xf32>
    %c16 = arith.constant 16 : index
    %36 = memref.load %arg1[%c16] : memref<64xf32, #tpu.memory_space<smem>>
    %37 = vector.broadcast %36 : f32 to vector<8x128xf32>
    %38 = arith.mulf %16, %37 : vector<8x128xf32>
    %39 = arith.addf %35, %38 : vector<8x128xf32>
    %c24 = arith.constant 24 : index
    %40 = memref.load %arg1[%c24] : memref<64xf32, #tpu.memory_space<smem>>
    %41 = vector.broadcast %40 : f32 to vector<8x128xf32>
    %42 = arith.mulf %24, %41 : vector<8x128xf32>
    %43 = arith.addf %39, %42 : vector<8x128xf32>
    %c32 = arith.constant 32 : index
    %44 = memref.load %arg1[%c32] : memref<64xf32, #tpu.memory_space<smem>>
    %45 = vector.broadcast %44 : f32 to vector<8x128xf32>
    %46 = arith.mulf %32, %45 : vector<8x128xf32>
    %47 = arith.addf %43, %46 : vector<8x128xf32>
    %c40 = arith.constant 40 : index
    %48 = memref.load %arg1[%c40] : memref<64xf32, #tpu.memory_space<smem>>
    %49 = vector.broadcast %48 : f32 to vector<8x128xf32>
    %50 = arith.addf %47, %49 : vector<8x128xf32>
    %cst_5 = arith.constant 0.000000e+00 : f32
    %51 = vector.broadcast %cst_5 : f32 to vector<8x128xf32>
    %52 = arith.maximumf %50, %51 : vector<8x128xf32>
    %c48 = arith.constant 48 : index
    %53 = memref.load %arg1[%c48] : memref<64xf32, #tpu.memory_space<smem>>
    %54 = vector.broadcast %53 : f32 to vector<8x128xf32>
    %55 = arith.mulf %52, %54 : vector<8x128xf32>
    %c9 = arith.constant 9 : index
    %56 = memref.load %arg1[%c9] : memref<64xf32, #tpu.memory_space<smem>>
    %57 = vector.broadcast %56 : f32 to vector<8x128xf32>
    %58 = arith.mulf %8, %57 : vector<8x128xf32>
    %c17 = arith.constant 17 : index
    %59 = memref.load %arg1[%c17] : memref<64xf32, #tpu.memory_space<smem>>
    %60 = vector.broadcast %59 : f32 to vector<8x128xf32>
    %61 = arith.mulf %16, %60 : vector<8x128xf32>
    %62 = arith.addf %58, %61 : vector<8x128xf32>
    %c25 = arith.constant 25 : index
    %63 = memref.load %arg1[%c25] : memref<64xf32, #tpu.memory_space<smem>>
    %64 = vector.broadcast %63 : f32 to vector<8x128xf32>
    %65 = arith.mulf %24, %64 : vector<8x128xf32>
    %66 = arith.addf %62, %65 : vector<8x128xf32>
    %c33 = arith.constant 33 : index
    %67 = memref.load %arg1[%c33] : memref<64xf32, #tpu.memory_space<smem>>
    %68 = vector.broadcast %67 : f32 to vector<8x128xf32>
    %69 = arith.mulf %32, %68 : vector<8x128xf32>
    %70 = arith.addf %66, %69 : vector<8x128xf32>
    %c41 = arith.constant 41 : index
    %71 = memref.load %arg1[%c41] : memref<64xf32, #tpu.memory_space<smem>>
    %72 = vector.broadcast %71 : f32 to vector<8x128xf32>
    %73 = arith.addf %70, %72 : vector<8x128xf32>
    %cst_6 = arith.constant 0.000000e+00 : f32
    %74 = vector.broadcast %cst_6 : f32 to vector<8x128xf32>
    %75 = arith.maximumf %73, %74 : vector<8x128xf32>
    %c49 = arith.constant 49 : index
    %76 = memref.load %arg1[%c49] : memref<64xf32, #tpu.memory_space<smem>>
    %77 = vector.broadcast %76 : f32 to vector<8x128xf32>
    %78 = arith.mulf %75, %77 : vector<8x128xf32>
    %79 = arith.addf %55, %78 : vector<8x128xf32>
    %c10 = arith.constant 10 : index
    %80 = memref.load %arg1[%c10] : memref<64xf32, #tpu.memory_space<smem>>
    %81 = vector.broadcast %80 : f32 to vector<8x128xf32>
    %82 = arith.mulf %8, %81 : vector<8x128xf32>
    %c18 = arith.constant 18 : index
    %83 = memref.load %arg1[%c18] : memref<64xf32, #tpu.memory_space<smem>>
    %84 = vector.broadcast %83 : f32 to vector<8x128xf32>
    %85 = arith.mulf %16, %84 : vector<8x128xf32>
    %86 = arith.addf %82, %85 : vector<8x128xf32>
    %c26 = arith.constant 26 : index
    %87 = memref.load %arg1[%c26] : memref<64xf32, #tpu.memory_space<smem>>
    %88 = vector.broadcast %87 : f32 to vector<8x128xf32>
    %89 = arith.mulf %24, %88 : vector<8x128xf32>
    %90 = arith.addf %86, %89 : vector<8x128xf32>
    %c34 = arith.constant 34 : index
    %91 = memref.load %arg1[%c34] : memref<64xf32, #tpu.memory_space<smem>>
    %92 = vector.broadcast %91 : f32 to vector<8x128xf32>
    %93 = arith.mulf %32, %92 : vector<8x128xf32>
    %94 = arith.addf %90, %93 : vector<8x128xf32>
    %c42 = arith.constant 42 : index
    %95 = memref.load %arg1[%c42] : memref<64xf32, #tpu.memory_space<smem>>
    %96 = vector.broadcast %95 : f32 to vector<8x128xf32>
    %97 = arith.addf %94, %96 : vector<8x128xf32>
    %cst_7 = arith.constant 0.000000e+00 : f32
    %98 = vector.broadcast %cst_7 : f32 to vector<8x128xf32>
    %99 = arith.maximumf %97, %98 : vector<8x128xf32>
    %c50 = arith.constant 50 : index
    %100 = memref.load %arg1[%c50] : memref<64xf32, #tpu.memory_space<smem>>
    %101 = vector.broadcast %100 : f32 to vector<8x128xf32>
    %102 = arith.mulf %99, %101 : vector<8x128xf32>
    %103 = arith.addf %79, %102 : vector<8x128xf32>
    %c11 = arith.constant 11 : index
    %104 = memref.load %arg1[%c11] : memref<64xf32, #tpu.memory_space<smem>>
    %105 = vector.broadcast %104 : f32 to vector<8x128xf32>
    %106 = arith.mulf %8, %105 : vector<8x128xf32>
    %c19 = arith.constant 19 : index
    %107 = memref.load %arg1[%c19] : memref<64xf32, #tpu.memory_space<smem>>
    %108 = vector.broadcast %107 : f32 to vector<8x128xf32>
    %109 = arith.mulf %16, %108 : vector<8x128xf32>
    %110 = arith.addf %106, %109 : vector<8x128xf32>
    %c27 = arith.constant 27 : index
    %111 = memref.load %arg1[%c27] : memref<64xf32, #tpu.memory_space<smem>>
    %112 = vector.broadcast %111 : f32 to vector<8x128xf32>
    %113 = arith.mulf %24, %112 : vector<8x128xf32>
    %114 = arith.addf %110, %113 : vector<8x128xf32>
    %c35 = arith.constant 35 : index
    %115 = memref.load %arg1[%c35] : memref<64xf32, #tpu.memory_space<smem>>
    %116 = vector.broadcast %115 : f32 to vector<8x128xf32>
    %117 = arith.mulf %32, %116 : vector<8x128xf32>
    %118 = arith.addf %114, %117 : vector<8x128xf32>
    %c43 = arith.constant 43 : index
    %119 = memref.load %arg1[%c43] : memref<64xf32, #tpu.memory_space<smem>>
    %120 = vector.broadcast %119 : f32 to vector<8x128xf32>
    %121 = arith.addf %118, %120 : vector<8x128xf32>
    %cst_8 = arith.constant 0.000000e+00 : f32
    %122 = vector.broadcast %cst_8 : f32 to vector<8x128xf32>
    %123 = arith.maximumf %121, %122 : vector<8x128xf32>
    %c51 = arith.constant 51 : index
    %124 = memref.load %arg1[%c51] : memref<64xf32, #tpu.memory_space<smem>>
    %125 = vector.broadcast %124 : f32 to vector<8x128xf32>
    %126 = arith.mulf %123, %125 : vector<8x128xf32>
    %127 = arith.addf %103, %126 : vector<8x128xf32>
    %c12 = arith.constant 12 : index
    %128 = memref.load %arg1[%c12] : memref<64xf32, #tpu.memory_space<smem>>
    %129 = vector.broadcast %128 : f32 to vector<8x128xf32>
    %130 = arith.mulf %8, %129 : vector<8x128xf32>
    %c20 = arith.constant 20 : index
    %131 = memref.load %arg1[%c20] : memref<64xf32, #tpu.memory_space<smem>>
    %132 = vector.broadcast %131 : f32 to vector<8x128xf32>
    %133 = arith.mulf %16, %132 : vector<8x128xf32>
    %134 = arith.addf %130, %133 : vector<8x128xf32>
    %c28 = arith.constant 28 : index
    %135 = memref.load %arg1[%c28] : memref<64xf32, #tpu.memory_space<smem>>
    %136 = vector.broadcast %135 : f32 to vector<8x128xf32>
    %137 = arith.mulf %24, %136 : vector<8x128xf32>
    %138 = arith.addf %134, %137 : vector<8x128xf32>
    %c36 = arith.constant 36 : index
    %139 = memref.load %arg1[%c36] : memref<64xf32, #tpu.memory_space<smem>>
    %140 = vector.broadcast %139 : f32 to vector<8x128xf32>
    %141 = arith.mulf %32, %140 : vector<8x128xf32>
    %142 = arith.addf %138, %141 : vector<8x128xf32>
    %c44 = arith.constant 44 : index
    %143 = memref.load %arg1[%c44] : memref<64xf32, #tpu.memory_space<smem>>
    %144 = vector.broadcast %143 : f32 to vector<8x128xf32>
    %145 = arith.addf %142, %144 : vector<8x128xf32>
    %cst_9 = arith.constant 0.000000e+00 : f32
    %146 = vector.broadcast %cst_9 : f32 to vector<8x128xf32>
    %147 = arith.maximumf %145, %146 : vector<8x128xf32>
    %c52 = arith.constant 52 : index
    %148 = memref.load %arg1[%c52] : memref<64xf32, #tpu.memory_space<smem>>
    %149 = vector.broadcast %148 : f32 to vector<8x128xf32>
    %150 = arith.mulf %147, %149 : vector<8x128xf32>
    %151 = arith.addf %127, %150 : vector<8x128xf32>
    %c13 = arith.constant 13 : index
    %152 = memref.load %arg1[%c13] : memref<64xf32, #tpu.memory_space<smem>>
    %153 = vector.broadcast %152 : f32 to vector<8x128xf32>
    %154 = arith.mulf %8, %153 : vector<8x128xf32>
    %c21 = arith.constant 21 : index
    %155 = memref.load %arg1[%c21] : memref<64xf32, #tpu.memory_space<smem>>
    %156 = vector.broadcast %155 : f32 to vector<8x128xf32>
    %157 = arith.mulf %16, %156 : vector<8x128xf32>
    %158 = arith.addf %154, %157 : vector<8x128xf32>
    %c29 = arith.constant 29 : index
    %159 = memref.load %arg1[%c29] : memref<64xf32, #tpu.memory_space<smem>>
    %160 = vector.broadcast %159 : f32 to vector<8x128xf32>
    %161 = arith.mulf %24, %160 : vector<8x128xf32>
    %162 = arith.addf %158, %161 : vector<8x128xf32>
    %c37 = arith.constant 37 : index
    %163 = memref.load %arg1[%c37] : memref<64xf32, #tpu.memory_space<smem>>
    %164 = vector.broadcast %163 : f32 to vector<8x128xf32>
    %165 = arith.mulf %32, %164 : vector<8x128xf32>
    %166 = arith.addf %162, %165 : vector<8x128xf32>
    %c45 = arith.constant 45 : index
    %167 = memref.load %arg1[%c45] : memref<64xf32, #tpu.memory_space<smem>>
    %168 = vector.broadcast %167 : f32 to vector<8x128xf32>
    %169 = arith.addf %166, %168 : vector<8x128xf32>
    %cst_10 = arith.constant 0.000000e+00 : f32
    %170 = vector.broadcast %cst_10 : f32 to vector<8x128xf32>
    %171 = arith.maximumf %169, %170 : vector<8x128xf32>
    %c53 = arith.constant 53 : index
    %172 = memref.load %arg1[%c53] : memref<64xf32, #tpu.memory_space<smem>>
    %173 = vector.broadcast %172 : f32 to vector<8x128xf32>
    %174 = arith.mulf %171, %173 : vector<8x128xf32>
    %175 = arith.addf %151, %174 : vector<8x128xf32>
    %c14 = arith.constant 14 : index
    %176 = memref.load %arg1[%c14] : memref<64xf32, #tpu.memory_space<smem>>
    %177 = vector.broadcast %176 : f32 to vector<8x128xf32>
    %178 = arith.mulf %8, %177 : vector<8x128xf32>
    %c22 = arith.constant 22 : index
    %179 = memref.load %arg1[%c22] : memref<64xf32, #tpu.memory_space<smem>>
    %180 = vector.broadcast %179 : f32 to vector<8x128xf32>
    %181 = arith.mulf %16, %180 : vector<8x128xf32>
    %182 = arith.addf %178, %181 : vector<8x128xf32>
    %c30 = arith.constant 30 : index
    %183 = memref.load %arg1[%c30] : memref<64xf32, #tpu.memory_space<smem>>
    %184 = vector.broadcast %183 : f32 to vector<8x128xf32>
    %185 = arith.mulf %24, %184 : vector<8x128xf32>
    %186 = arith.addf %182, %185 : vector<8x128xf32>
    %c38 = arith.constant 38 : index
    %187 = memref.load %arg1[%c38] : memref<64xf32, #tpu.memory_space<smem>>
    %188 = vector.broadcast %187 : f32 to vector<8x128xf32>
    %189 = arith.mulf %32, %188 : vector<8x128xf32>
    %190 = arith.addf %186, %189 : vector<8x128xf32>
    %c46 = arith.constant 46 : index
    %191 = memref.load %arg1[%c46] : memref<64xf32, #tpu.memory_space<smem>>
    %192 = vector.broadcast %191 : f32 to vector<8x128xf32>
    %193 = arith.addf %190, %192 : vector<8x128xf32>
    %cst_11 = arith.constant 0.000000e+00 : f32
    %194 = vector.broadcast %cst_11 : f32 to vector<8x128xf32>
    %195 = arith.maximumf %193, %194 : vector<8x128xf32>
    %c54 = arith.constant 54 : index
    %196 = memref.load %arg1[%c54] : memref<64xf32, #tpu.memory_space<smem>>
    %197 = vector.broadcast %196 : f32 to vector<8x128xf32>
    %198 = arith.mulf %195, %197 : vector<8x128xf32>
    %199 = arith.addf %175, %198 : vector<8x128xf32>
    %c15 = arith.constant 15 : index
    %200 = memref.load %arg1[%c15] : memref<64xf32, #tpu.memory_space<smem>>
    %201 = vector.broadcast %200 : f32 to vector<8x128xf32>
    %202 = arith.mulf %8, %201 : vector<8x128xf32>
    %c23 = arith.constant 23 : index
    %203 = memref.load %arg1[%c23] : memref<64xf32, #tpu.memory_space<smem>>
    %204 = vector.broadcast %203 : f32 to vector<8x128xf32>
    %205 = arith.mulf %16, %204 : vector<8x128xf32>
    %206 = arith.addf %202, %205 : vector<8x128xf32>
    %c31 = arith.constant 31 : index
    %207 = memref.load %arg1[%c31] : memref<64xf32, #tpu.memory_space<smem>>
    %208 = vector.broadcast %207 : f32 to vector<8x128xf32>
    %209 = arith.mulf %24, %208 : vector<8x128xf32>
    %210 = arith.addf %206, %209 : vector<8x128xf32>
    %c39 = arith.constant 39 : index
    %211 = memref.load %arg1[%c39] : memref<64xf32, #tpu.memory_space<smem>>
    %212 = vector.broadcast %211 : f32 to vector<8x128xf32>
    %213 = arith.mulf %32, %212 : vector<8x128xf32>
    %214 = arith.addf %210, %213 : vector<8x128xf32>
    %c47 = arith.constant 47 : index
    %215 = memref.load %arg1[%c47] : memref<64xf32, #tpu.memory_space<smem>>
    %216 = vector.broadcast %215 : f32 to vector<8x128xf32>
    %217 = arith.addf %214, %216 : vector<8x128xf32>
    %cst_12 = arith.constant 0.000000e+00 : f32
    %218 = vector.broadcast %cst_12 : f32 to vector<8x128xf32>
    %219 = arith.maximumf %217, %218 : vector<8x128xf32>
    %c55 = arith.constant 55 : index
    %220 = memref.load %arg1[%c55] : memref<64xf32, #tpu.memory_space<smem>>
    %221 = vector.broadcast %220 : f32 to vector<8x128xf32>
    %222 = arith.mulf %219, %221 : vector<8x128xf32>
    %223 = arith.addf %199, %222 : vector<8x128xf32>
    %c56 = arith.constant 56 : index
    %224 = memref.load %arg1[%c56] : memref<64xf32, #tpu.memory_space<smem>>
    %225 = vector.broadcast %224 : f32 to vector<8x128xf32>
    %226 = arith.addf %223, %225 : vector<8x128xf32>
    %cst_13 = arith.constant 0.000000e+00 : f32
    %227 = vector.broadcast %cst_13 : f32 to vector<8x128xf32>
    %228 = arith.subf %227, %226 : vector<8x128xf32>
    %229 = math.exp %228 : vector<8x128xf32>
    %cst_14 = arith.constant 1.000000e+00 : f32
    %230 = vector.broadcast %cst_14 : f32 to vector<8x128xf32>
    %231 = arith.addf %230, %229 : vector<8x128xf32>
    %232 = tpu.reciprocal %231 {approx = true} : vector<8x128xf32> -> vector<8x128xf32>
    %c0_15 = arith.constant 0 : index
    %c0_16 = arith.constant 0 : index
    %233 = vector.load %arg3[%c0_15, %c0_16] : memref<8x128xf32, #tpu.memory_space<vmem>>, vector<8x128xf32>
    tpu.vector_store %arg3[%c0_15, %c0_16], %232 {strides = array<i32>} : memref<8x128xf32, #tpu.memory_space<vmem>>, vector<8x128xf32>,
    return
  }
  func.func @transform_0(%arg0: i32) -> i32 {
    %c0_i32 = arith.constant 0 : i32
    %c0_i32_0 = arith.constant 0 : i32
    return %c0_i32 : i32
  }
  func.func @transform_1(%arg0: i32) -> (i32, i32) {
    %c0_i32 = arith.constant 0 : i32
    %c0_i32_0 = arith.constant 0 : i32
    return %arg0, %c0_i32 : i32, i32
  }
  func.func @transform_2(%arg0: i32) -> (i32, i32) {
    %c0_i32 = arith.constant 0 : i32
    %c0_i32_0 = arith.constant 0 : i32
    return %arg0, %c0_i32 : i32, i32
  }
}

</mosaic_0001>

<bundles_post_ra>
// kernel: tpu_custom_call.1
= control target key start
LH: loop header
LB: loop body
LE: loop exit
PB: predicated region body
PF: predicated region fallthrough
CT: control target
= control target key end

     0   :  { %7 = vsyncpa [#allocation5], 0  ;;  %s636_s0 = inlined_call_operand.hbm [shape: f32[64], index: 0, kind: input, shape index: {}]   ;;  %s637_s1 = inlined_call_operand.hbm [shape: f32[8,128], index: 1, kind: input, shape index: {}]   ;;  %s638_s2 = inlined_call_operand.hbm [shape: f32[8,128], index: 2, kind: output, shape index: {}]  }
   0x1   :  { %8 = vsyncpa [#allocation3], 0 }
   0x2   :  { %9 = vsyncpa [#allocation4], 0  ;;  %s335_s11 = scalar_lea.hbm %s636_s0, 16 }
   0x3   :  { %p336_p0 = scmp.ne.s32.totalorder %s636_s0, %s335_s11  ;;  %p339_p1 = scmp.lt.u32.totalorder %s335_s11, %s636_s0 }
   0x5   :  { %p341_p2 = pnand %p339_p1, %p336_p0 }
   0x7   :  { %344 = shalt.err (!%p341_p2)
}
   0x8   :  { %s395_s16 = smov [#allocation2]   ;;  %s396_s19 = smov [#allocation6]  }
   0x9   :  { %17 = dma.hbm_to_smem %s636_s0, 16, %s395_s16, [#allocation5]  }
   0xa   :  { %s24_s20 = sshll.u32 %s396_s19, 4  ;;  %s345_s23 = scalar_lea.hbm %s637_s1, 128  ;;  %s25_s20 = int_to_ptr.vmem [resolvable:$true] %s24_s20 }
   0xb   :  { %p346_p3 = scmp.ne.s32.totalorder %s637_s1, %s345_s23  ;;  %p349_p4 = scmp.lt.u32.totalorder %s345_s23, %s637_s1 }
   0xd   :  { %p351_p5 = pnand %p349_p4, %p346_p3 }
   0xf   :  { %354 = shalt.err (!%p351_p5)
}
  0x10   :  { %s355_s28 = scalar_lea.vmem %s25_s20, 128  ;;  %p360_p7 = scmp.lt.s32.totalorder %s25_s20, %s25_s20 }
  0x11   :  { %p356_p6 = scmp.ne.s32.totalorder %s25_s20, %s355_s28  ;;  %p361_p8 = scmp.lt.s32.totalorder %s355_s28, %s355_s28 }
  0x13   :  { %p362_p9 = por %p361_p8, %p360_p7 }
  0x15   :  { %p363_p10 = pnand %p362_p9, %p356_p6 }
  0x17   :  { %366 = shalt.err (!%p363_p10)
}
  0x18   :  { %27 = dma.hbm_to_vmem [thread:$0]  %s637_s1, 128, %s25_s20, [#allocation3]  }
  0x19   :  { %389 = dma.done.wait [#allocation5], 16  }
  0x1a   :  { %390 = vsyncadd [#allocation5], 4294967280 }
  0x1b   :  { %391 = dma.done.wait [#allocation3], 128  }
  0x1c   :  { %392 = vsyncadd [#allocation3], 4294967168 }
  0x1d   :  { %34 = sfence }
  0x1e   :  { %s36_s30 = sld [smem:[#allocation2]]  ;;  %s272_s3 = sld [smem:[#allocation2 + $0x4]]  ;;  %v35_v0 = vld [vmem:[#allocation6] sm:$0xff] }
  0x1f   :  { %s273_s4 = sld [smem:[#allocation2 + $0x1]]  ;;  %s274_s5 = sld [smem:[#allocation2 + $0x5]] }
  0x20   :  { %s275_s6 = sld [smem:[#allocation2 + $0x2]]  ;;  %s437_s7 = sld [smem:[#allocation2 + $0x6]] }
  0x21   :  { %s277_s8 = sld [smem:[#allocation2 + $0x3]]  ;;  %s439_s9 = sld [smem:[#allocation2 + $0x7]] }
  0x22   :  { %s441_s10 = sld [smem:[#allocation2 + $0x8]]  ;;  %s453_s15 = sld [smem:[#allocation2 + $0x9]] }
  0x23   :  { %s443_s1 = sld [smem:[#allocation2 + $0x10]]  ;;  %s455_s16 = sld [smem:[#allocation2 + $0x11]] }
  0x24   :  { %s445_s11 = sld [smem:[#allocation2 + $0x18]]  ;;  %v37_v1 = vstv %s36_s30  ;;  %v40_v2 = vstv %s272_s3  ;;  %s458_s17 = sld [smem:[#allocation2 + $0x19]] }
  0x25   :  { %s447_s12 = sld [smem:[#allocation2 + $0x20]]  ;;  %v38_v3 = vmul.f32 %v37_v1, %v35_v0  ;;  %v44_v4 = vstv %s273_s4  ;;  %v47_v5 = vstv %s274_s5  ;;  %s460_s18 = sld [smem:[#allocation2 + $0x21]] }
  0x26   :  { %s449_s13 = sld [smem:[#allocation2 + $0x28]]  ;;  %v45_v6 = vmul.f32 %v44_v4, %v35_v0  ;;  %v51_v7 = vstv %s275_s6  ;;  %v54_v8 = vstv %s437_s7  ;;  %s463_s19 = sld [smem:[#allocation2 + $0x29]] }
  0x27   :  { %s451_s14 = sld [smem:[#allocation2 + $0x30]]  ;;  %v41_v9 = vadd.f32 %v40_v2, %v38_v3  ;;  %v52_v10 = vmul.f32 %v51_v7, %v35_v0  ;;  %v58_v11 = vstv %s277_s8  ;;  %v61_v12 = vstv %s439_s9  ;;  %s465_s20 = sld [smem:[#allocation2 + $0x31]] }
  0x28   :  { %v48_v13 = vadd.f32 %v47_v5, %v45_v6  ;;  %v59_v14 = vmul.f32 %v58_v11, %v35_v0  ;;  %v65_v15 = vstv %s441_s10  ;;  %s468_s21 = sld [smem:[#allocation2 + $0xa]]  ;;  %v87_v25 = vstv %s453_s15  ;;  %s488_s25 = sld [smem:[#allocation2 + $0xb]] }
  0x29   :  { %s470_s22 = sld [smem:[#allocation2 + $0x12]]  ;;  %v472_v16 = vmax.f32 %v41_v9, 0.0  ;;  %v55_v17 = vadd.f32 %v54_v8, %v52_v10  ;;  %v68_v18 = vstv %s443_s1  ;;  %v90_v26 = vstv %s455_s16  ;;  %s490_s26 = sld [smem:[#allocation2 + $0x13]] }
  0x2a   :  { %s475_s23 = sld [smem:[#allocation2 + $0x1a]]  ;;  %v479_v19 = vmax.f32 %v48_v13, 0.0  ;;  %v62_v20 = vadd.f32 %v61_v12, %v59_v14  ;;  %v72_v21 = vstv %s445_s11  ;;  %s497_s27 = sld [smem:[#allocation2 + $0x1b]]  ;;  %v94_v33 = vstv %s458_s17 }
  0x2b   :  { %s477_s24 = sld [smem:[#allocation2 + $0x22]]  ;;  %v76_v22 = vstv %s447_s12  ;;  %v483_v23 = vmax.f32 %v55_v17, 0.0  ;;  %v66_v24 = vmul.f32 %v65_v15, %v472_v16  ;;  %v88_v29 = vmul.f32 %v87_v25, %v472_v16  ;;  %s505_s0 = sld [smem:[#allocation2 + $0x23]] }
  0x2c   :  { %v492_v27 = vmax.f32 %v62_v20, 0.0  ;;  %v69_v28 = vmul.f32 %v68_v18, %v479_v19  ;;  %v91_v30 = vmul.f32 %v90_v26, %v479_v19  ;;  %v80_v32 = vstv %s449_s13  ;;  %s503_s28 = sld [smem:[#allocation2 + $0x2a]]  ;;  %s515_s30 = sld [smem:[#allocation2 + $0xc]] }
  0x2d   :  { %v73_v31 = vmul.f32 %v72_v21, %v483_v23  ;;  %v98_v34 = vstv %s460_s18  ;;  %v95_v38 = vmul.f32 %v94_v33, %v483_v23  ;;  %s509_s29 = sld [smem:[#allocation2 + $0x32]]  ;;  %v84_v39 = vstv %s451_s14  ;;  %s517_s3 = sld [smem:[#allocation2 + $0x14]] }
  0x2e   :  { %v70_v35 = vadd.f32 %v69_v28, %v66_v24  ;;  %v77_v36 = vmul.f32 %v76_v22, %v492_v27  ;;  %v92_v37 = vadd.f32 %v91_v30, %v88_v29  ;;  %v99_v40 = vmul.f32 %v98_v34, %v492_v27  ;;  %s525_s4 = sld [smem:[#allocation2 + $0x1c]]  ;;  %s530_s6 = sld [smem:[#allocation2 + $0x2b]] }
  0x2f   :  { %v110_v41 = vstv %s468_s21  ;;  %v113_v42 = vstv %s470_s22  ;;  %v102_v47 = vstv %s463_s19  ;;  %v106_v48 = vstv %s465_s20  ;;  %s527_s5 = sld [smem:[#allocation2 + $0x24]]  ;;  %s536_s7 = sld [smem:[#allocation2 + $0x33]] }
  0x30   :  { %v74_v43 = vadd.f32 %v73_v31, %v70_v35  ;;  %v96_v44 = vadd.f32 %v95_v38, %v92_v37  ;;  %v111_v45 = vmul.f32 %v110_v41, %v472_v16  ;;  %v114_v46 = vmul.f32 %v113_v42, %v479_v19  ;;  %s538_s8 = sld [smem:[#allocation2 + $0xd]]  ;;  %s550_s1 = sld [smem:[#allocation2 + $0x2c]] }
  0x31   :  { %v117_v49 = vstv %s475_s23  ;;  %v121_v50 = vstv %s477_s24  ;;  %v133_v56 = vstv %s488_s25  ;;  %v136_v57 = vstv %s490_s26  ;;  %s541_s9 = sld [smem:[#allocation2 + $0x15]]  ;;  %s557_s12 = sld [smem:[#allocation2 + $0x34]] }
  0x32   :  { %v78_v51 = vadd.f32 %v77_v36, %v74_v43  ;;  %v100_v52 = vadd.f32 %v99_v40, %v96_v44  ;;  %v115_v53 = vadd.f32 %v114_v46, %v111_v45  ;;  %v118_v54 = vmul.f32 %v117_v49, %v483_v23  ;;  %s543_s10 = sld [smem:[#allocation2 + $0x1d]]  ;;  %s559_s13 = sld [smem:[#allocation2 + $0xe]] }
  0x33   :  { %v122_v55 = vmul.f32 %v121_v50, %v492_v27  ;;  %v140_v58 = vstv %s497_s27  ;;  %v134_v62 = vmul.f32 %v133_v56, %v472_v16  ;;  %v125_v63 = vstv %s503_s28  ;;  %s552_s11 = sld [smem:[#allocation2 + $0x25]]  ;;  %s562_s14 = sld [smem:[#allocation2 + $0x16]] }
  0x34   :  { %v81_v59 = vadd.f32 %v80_v32, %v78_v51  ;;  %v103_v60 = vadd.f32 %v102_v47, %v100_v52  ;;  %v119_v61 = vadd.f32 %v118_v54, %v115_v53  ;;  %v137_v0 = vmul.f32 %v136_v57, %v479_v19  ;;  %s564_s15 = sld [smem:[#allocation2 + $0x1e]]  ;;  %s571_s16 = sld [smem:[#allocation2 + $0x2d]] }
  0x35   :  { %v141_v1 = vmul.f32 %v140_v58, %v483_v23  ;;  %v144_v2 = vstv %s505_s0  ;;  %v129_v6 = vstv %s509_s29  ;;  %v156_v9 = vstv %s515_s30  ;;  %s573_s17 = sld [smem:[#allocation2 + $0x26]]  ;;  %s580_s18 = sld [smem:[#allocation2 + $0xf]] }
  0x36   :  { %v82_v3 = vmax.f32 %v81_v59, 0.0  ;;  %v104_v4 = vmax.f32 %v103_v60, 0.0  ;;  %v123_v5 = vadd.f32 %v122_v55, %v119_v61  ;;  %v138_v7 = vadd.f32 %v137_v0, %v134_v62  ;;  %s582_s19 = sld [smem:[#allocation2 + $0x17]]  ;;  %s586_s20 = sld [smem:[#allocation2 + $0x35]] }
  0x37   :  { %v145_v8 = vmul.f32 %v144_v2, %v492_v27  ;;  %v159_v10 = vstv %s517_s3  ;;  %v157_v14 = vmul.f32 %v156_v9, %v472_v16  ;;  %v163_v18 = vstv %s525_s4  ;;  %s591_s21 = sld [smem:[#allocation2 + $0x1f]]  ;;  %s596_s23 = sld [smem:[#allocation2 + $0x2e]] }
  0x38   :  { %v85_v11 = vmul.f32 %v84_v39, %v82_v3  ;;  %v107_v12 = vmul.f32 %v106_v48, %v104_v4  ;;  %v126_v13 = vadd.f32 %v125_v63, %v123_v5  ;;  %v142_v15 = vadd.f32 %v141_v1, %v138_v7  ;;  %s593_s22 = sld [smem:[#allocation2 + $0x27]]  ;;  %s609_s25 = sld [smem:[#allocation2 + $0x36]] }
  0x39   :  { %v160_v17 = vmul.f32 %v159_v10, %v479_v19  ;;  %v167_v20 = vstv %s527_s5  ;;  %v148_v24 = vstv %s530_s6  ;;  %v164_v25 = vmul.f32 %v163_v18, %v483_v23  ;;  %s607_s24 = sld [smem:[#allocation2 + $0x2f]]  ;;  %s327_s27 = sld [smem:[#allocation2 + $0x38]] }
  0x3a   :  { %v108_v21 = vadd.f32 %v107_v12, %v85_v11  ;;  %v127_v22 = vmax.f32 %v126_v13, 0.0  ;;  %v146_v26 = vadd.f32 %v145_v8, %v142_v15  ;;  %v152_v28 = vstv %s536_s7  ;;  %s326_s26 = sld [smem:[#allocation2 + $0x37]]  ;;  %s397_s28 = smov [#allocation7]  }
  0x3b   :  { %v161_v29 = vadd.f32 %v160_v17, %v157_v14  ;;  %v168_v30 = vmul.f32 %v167_v20, %v492_v27  ;;  %v179_v32 = vstv %s538_s8  ;;  %v182_v33 = vstv %s541_s9  ;;  %s262_s0 = sshll.u32 %s397_s28, 4  ;;  %s263_s0 = int_to_ptr.vmem [resolvable:$true] %s262_s0 }
  0x3c   :  { %v130_v31 = vmul.f32 %v129_v6, %v127_v22  ;;  %v186_v34 = vstv %s543_s10  ;;  %v149_v35 = vadd.f32 %v148_v24, %v146_v26  ;;  %v180_v37 = vmul.f32 %v179_v32, %v472_v16  ;;  %s367_s29 = scalar_lea.vmem %s263_s0, 128  ;;  %p372_p12 = scmp.lt.s32.totalorder %s263_s0, %s263_s0 }
  0x3d   :  { %v165_v36 = vadd.f32 %v164_v25, %v161_v29  ;;  %v183_v38 = vmul.f32 %v182_v33, %v479_v19  ;;  %v171_v40 = vstv %s550_s1  ;;  %v187_v41 = vmul.f32 %v186_v34, %v483_v23  ;;  %p368_p11 = scmp.ne.s32.totalorder %s263_s0, %s367_s29  ;;  %p373_p13 = scmp.lt.s32.totalorder %s367_s29, %s367_s29 }
  0x3e   :  { %v131_v39 = vadd.f32 %v130_v31, %v108_v21  ;;  %v190_v42 = vstv %s552_s11  ;;  %v150_v43 = vmax.f32 %v149_v35, 0.0  ;;  %v175_v47 = vstv %s557_s12 }
  0x3f   :  { %v169_v44 = vadd.f32 %v168_v30, %v165_v36  ;;  %v184_v45 = vadd.f32 %v183_v38, %v180_v37  ;;  %v191_v46 = vmul.f32 %v190_v42, %v492_v27  ;;  %v202_v48 = vstv %s559_s13  ;;  %p374_p0 = por %p373_p13, %p372_p12 }
  0x40   :  { %v205_v49 = vstv %s562_s14  ;;  %v209_v50 = vstv %s564_s15  ;;  %v153_v51 = vmul.f32 %v152_v28, %v150_v43  ;;  %v203_v54 = vmul.f32 %v202_v48, %v472_v16 }
  0x41   :  { %v172_v52 = vadd.f32 %v171_v40, %v169_v44  ;;  %v188_v53 = vadd.f32 %v187_v41, %v184_v45  ;;  %v194_v55 = vstv %s571_s16  ;;  %v206_v56 = vmul.f32 %v205_v49, %v479_v19  ;;  %p375_p1 = pnand %p374_p0, %p368_p11 }
  0x42   :  { %v210_v57 = vmul.f32 %v209_v50, %v483_v23  ;;  %v213_v58 = vstv %s573_s17  ;;  %v154_v59 = vadd.f32 %v153_v51, %v131_v39  ;;  %v225_v0 = vstv %s580_s18 }
  0x43   :  { %v173_v60 = vmax.f32 %v172_v52, 0.0  ;;  %v192_v61 = vadd.f32 %v191_v46, %v188_v53  ;;  %v207_v62 = vadd.f32 %v206_v56, %v203_v54  ;;  %v214_v63 = vmul.f32 %v213_v58, %v492_v27 }
  0x44   :  { %v228_v1 = vstv %s582_s19  ;;  %v226_v4 = vmul.f32 %v225_v0, %v472_v16  ;;  %v198_v6 = vstv %s586_s20  ;;  %v232_v8 = vstv %s591_s21 }
  0x45   :  { %v176_v2 = vmul.f32 %v175_v47, %v173_v60  ;;  %v195_v3 = vadd.f32 %v194_v55, %v192_v61  ;;  %v229_v5 = vmul.f32 %v228_v1, %v479_v19  ;;  %v211_v7 = vadd.f32 %v210_v57, %v207_v62 }
  0x46   :  { %v236_v9 = vstv %s593_s22  ;;  %v217_v11 = vstv %s596_s23  ;;  %v233_v13 = vmul.f32 %v232_v8, %v483_v23  ;;  %v240_v19 = vstv %s607_s24 }
  0x47   :  { %v196_v10 = vmax.f32 %v195_v3, 0.0  ;;  %v230_v12 = vadd.f32 %v229_v5, %v226_v4  ;;  %v177_v14 = vadd.f32 %v176_v2, %v154_v59  ;;  %v215_v15 = vadd.f32 %v214_v63, %v211_v7 }
  0x48   :  { %v237_v17 = vmul.f32 %v236_v9, %v492_v27  ;;  %v221_v21 = vstv %s609_s25  ;;  %v244_v29 = vstv %s326_s26  ;;  %v248_v23 = vstv %s327_s27 }
  0x49   :  { %v199_v18 = vmul.f32 %v198_v6, %v196_v10  ;;  %v234_v16 = vadd.f32 %v233_v13, %v230_v12  ;;  %v218_v20 = vadd.f32 %v217_v11, %v215_v15 }
  0x4b   :  { %v238_v22 = vadd.f32 %v237_v17, %v234_v16  ;;  %v200_v24 = vadd.f32 %v199_v18, %v177_v14  ;;  %v219_v25 = vmax.f32 %v218_v20, 0.0 }
  0x4d   :  { %v241_v26 = vadd.f32 %v240_v19, %v238_v22  ;;  %v222_v28 = vmul.f32 %v221_v21, %v219_v25 }
  0x4f   :  { %v242_v30 = vmax.f32 %v241_v26, 0.0  ;;  %v223_v31 = vadd.f32 %v222_v28, %v200_v24 }
  0x51   :  { %v245_v32 = vmul.f32 %v244_v29, %v242_v30 }
  0x53   :  { %v246_v33 = vadd.f32 %v245_v32, %v223_v31 }
  0x55   :  { %v249_v34 = vadd.f32 %v248_v23, %v246_v33 }
  0x57   :  { %v250_v35 = vsub.f32 0.0, %v249_v34 }
  0x59   :  { %v251_v27 = vmul.f32 1.442695, %v250_v35 }
  0x5b   :  { %331 = vpow2.f32 %v251_v27 }
  0x65   :  { %v332_v36 = vpop.eup %331 }
  0x66   :  { %v253_v37 = vadd.f32 1.0, %v332_v36 }
  0x68   :  { %333 = vrcp.f32 %v253_v37 }
  0x72   :  { %v334_v38 = vpop.eup %333 }
  0x73   :  { %255 = vst [vmem:[#allocation7] sm:$0xff] %v334_v38 }
  0x74   :  { %378 = shalt.err (!%p375_p1)
}
  0x75   :  { %s379_s4 = scalar_lea.hbm %s638_s2, 128 }
  0x76   :  { %p380_p2 = scmp.ne.s32.totalorder %s638_s2, %s379_s4  ;;  %p383_p3 = scmp.lt.u32.totalorder %s379_s4, %s638_s2 }
  0x78   :  { %p385_p4 = pnand %p383_p3, %p380_p2 }
  0x7a   :  { %388 = shalt.err (!%p385_p4)
}
  0x7b   :  { %265 = dma.vmem_to_hbm [thread:$0]  %s263_s0, 128, %s638_s2, [#allocation4]  }
  0x7c   :  { %393 = dma.done.wait [#allocation4], 128  }
  0x7d   :  { %394 = vsyncadd [#allocation4], 4294967168 }
  0x7e   :  { %269 = vsyncpa [#allocation3], 1 }
  0x7f   :  { %270 = vsyncpa [#allocation4], 1 }
  0x80   :  { %271 = vsyncpa [#allocation5], 1 }

</bundles_post_ra>
